<compile_context>
chip_gen: v5e
topology: v5e:2x2
jax: 0.10.0
libtpu: 0.0.40
codegen_flags: <defaults>
</compile_context>

<pallas_src>
import jax
import jax.numpy as jnp
from jax.experimental import pallas as pl
from jax.experimental.pallas import tpu as pltpu

D_IN, H1, H2, N_OUT = 28 * 28, 4, 15, 10

# --------------------------------------------------------------------------
# Small packed-parameter buffer (everything except w1), every band starting
# on a multiple-of-8 row so static in-kernel slices are sublane-aligned.
# w1 travels separately in the compute dtype (matches x).
# --------------------------------------------------------------------------
B1_R, W2_R, B2_R, W3_R, B3_R = 0, 8, 16, 24, 40
P_ROWS, P_COLS = 48, 16


def _pack_small_params(b1, w2, b2, w3, b3):
    """w* are stored transposed as (in_features, out_features)."""
    buf = jnp.zeros((P_ROWS, P_COLS), jnp.float32)
    buf = buf.at[B1_R, 0:H1].set(b1.astype(jnp.float32))
    buf = buf.at[W2_R:W2_R + H1, 0:H2].set(w2.astype(jnp.float32))
    buf = buf.at[B2_R, 0:H2].set(b2.astype(jnp.float32))
    buf = buf.at[W3_R:W3_R + H2, 0:N_OUT].set(w3.astype(jnp.float32))
    buf = buf.at[B3_R, 0:N_OUT].set(b3.astype(jnp.float32))
    return buf


def _mlp_kernel(x_ref, w1_ref, p_ref, out_ref):
    x = x_ref[...]                                    # (TB, 784) f32 or bf16
    w1 = w1_ref[...]                                  # (784, 4), same dtype as x

    # Static, sublane-aligned views into the small packed parameter block.
    b1 = p_ref[B1_R:B1_R + 1, 0:H1]                   # (1, 4)
    w2 = p_ref[W2_R:W2_R + H1, 0:H2]                  # (4, 15)
    b2 = p_ref[B2_R:B2_R + 1, 0:H2]                   # (1, 15)
    w3 = p_ref[W3_R:W3_R + H2, 0:N_OUT]               # (15, 10)
    b3 = p_ref[B3_R:B3_R + 1, 0:N_OUT]                # (1, 10)

    # Layer 1: the only real contraction (K=784); f32 accumulate on the MXU.
    h1 = jnp.dot(x, w1, preferred_element_type=jnp.float32) + b1
    h1 = jnp.maximum(h1, 0.0)                         # (TB, 4) f32

    # Layers 2 & 3: tiny-K matmuls, also on the MXU (few vmatmul pushes per
    # tile) — far cheaper than lane-sparse broadcast-MAC loops on the VPU.
    h2 = jnp.dot(h1, w2, preferred_element_type=jnp.float32) + b2
    h2 = jnp.maximum(h2, 0.0)                         # (TB, 15) f32
    logits = jnp.dot(h2, w3, preferred_element_type=jnp.float32) + b3  # (TB, 10)

    # Numerically-stable softmax over dim=1 (exact reciprocal rides the EUP).
    m = jnp.max(logits, axis=1, keepdims=True)
    e = jnp.exp(logits - m)
    s = jnp.sum(e, axis=1, keepdims=True)
    probs = e * pl.reciprocal(s, approx=False)

    # One merged output block: logits in lanes 0..9, probs in lanes 10..19.
    out_ref[:, 0:N_OUT] = logits
    out_ref[:, N_OUT:2 * N_OUT] = probs
    # Note: the PyTorch forward also computes log_softmax but never returns
    # it; that dead computation is skipped.


def _round_up(n, m):
    return ((n + m - 1) // m) * m


def _choose_tb(B):
    """Batch tile: <=2048 rows; tiny batches get one tile, otherwise >=2 tiles
    so the 'parallel' batch axis feeds both v7x TensorCores."""
    if B <= 128:
        return _round_up(max(B, 1), 8)
    return min(2048, _round_up(pl.cdiv(B, 2), 8))


@jax.jit
def baseline_nn_forward(x_nchw, w1, b1, w2, b2, w3, b3):
    """x_nchw: (B, 1, 28, 28). Returns (logits, softmax_probs), both (B, 10)."""
    B = x_nchw.shape[0]
    x = x_nchw.reshape(-1, D_IN)                      # free reshape, no copy pass

    # Compute in the dtype the caller already stores x in (bf16 stays bf16 —
    # no extra wrapper-side HBM cast pass); anything else is promoted to f32.
    compute_dtype = jnp.bfloat16 if x.dtype == jnp.bfloat16 else jnp.float32
    if x.dtype != compute_dtype:
        x = x.astype(compute_dtype)

    w1c = w1.astype(compute_dtype)                    # one-time tiny (784,4) cast
    params = _pack_small_params(b1, w2, b2, w3, b3)   # ~3 KB packed buffer

    TB = _choose_tb(B)
    num_tiles = pl.cdiv(B, TB)                        # ragged last block is fine

    out = pl.pallas_call(
        _mlp_kernel,
        out_shape=jax.ShapeDtypeStruct((B, 2 * N_OUT), jnp.float32),
        grid=(num_tiles,),
        in_specs=[
            pl.BlockSpec((TB, D_IN), lambda i: (i, 0)),         # x: tiled on batch
            pl.BlockSpec((D_IN, H1), lambda i: (0, 0)),          # w1: resident
            pl.BlockSpec((P_ROWS, P_COLS), lambda i: (0, 0)),    # packed params
        ],
        out_specs=pl.BlockSpec((TB, 2 * N_OUT), lambda i: (i, 0)),
        compiler_params=pltpu.CompilerParams(
            dimension_semantics=("parallel",),        # megacore sharding on v7x
            vmem_limit_bytes=48 * 1024 * 1024,        # covers 2048-row f32 tiles
        ),
    )(x, w1c, params)

    logits = out[:, 0:N_OUT]
    probs = out[:, N_OUT:2 * N_OUT]
    return logits, probs


# ----------------------------------------------------------------------------
# Init + reference
# ----------------------------------------------------------------------------
def init_params(key):
    """nn.Linear-style init: U(-1/sqrt(fan_in), 1/sqrt(fan_in)).
    Weights stored transposed as (in_features, out_features)."""
    def linear(key, fan_in, fan_out):
        kw, kb = jax.random.split(key)
        bound = 1.0 / jnp.sqrt(jnp.float32(fan_in))
        w_t = jax.random.uniform(kw, (fan_in, fan_out), jnp.float32,
                                 minval=-bound, maxval=bound)
        b = jax.random.uniform(kb, (fan_out,), jnp.float32,
                               minval=-bound, maxval=bound)
        return w_t, b

    k1, k2, k3 = jax.random.split(key, 3)
    w1, b1 = linear(k1, D_IN, H1)
    w2, b2 = linear(k2, H1, H2)
    w3, b3 = linear(k3, H2, N_OUT)
    return w1, b1, w2, b2, w3, b3


def _reference(x_nchw, w1, b1, w2, b2, w3, b3):
    hi = jax.lax.Precision.HIGHEST
    xf = x_nchw.reshape(-1, D_IN).astype(jnp.float32)
    h1 = jnp.maximum(jnp.dot(xf, w1, precision=hi) + b1, 0.0)
    h2 = jnp.maximum(jnp.dot(h1, w2, precision=hi) + b2, 0.0)
    logits = jnp.dot(h2, w3, precision=hi) + b3
    return logits, jax.nn.softmax(logits, axis=1)


if __name__ == "__main__":
    key = jax.random.PRNGKey(0)
    k_params, k_small, k_big = jax.random.split(key, 3)
    params = init_params(k_params)

    # --- small MNIST-like batch: NCHW (B=8, 1, 28, 28), single tile ---
    x_small = jax.random.normal(k_small, (8, 1, 28, 28), dtype=jnp.float32)
    logits, probs = baseline_nn_forward(x_small, *params)
    jax.block_until_ready((logits, probs))
    ref_logits, ref_probs = _reference(x_small, *params)
    assert logits.shape == (8, 10) and probs.shape == (8, 10)
    assert jnp.allclose(logits, ref_logits, atol=1e-4, rtol=1e-4)
    assert jnp.allclose(probs, ref_probs, atol=1e-4, rtol=1e-4)
    assert jnp.allclose(jnp.sum(probs, axis=1), 1.0, atol=1e-5)

    # --- multi-tile ragged path: B=600 -> 2 tiles, no wrapper-side pad ---
    x_big = jax.random.normal(k_big, (600, 1, 28, 28), dtype=jnp.float32)
    logits_b, probs_b = baseline_nn_forward(x_big, *params)
    jax.block_until_ready((logits_b, probs_b))
    ref_logits_b, ref_probs_b = _reference(x_big, *params)
    assert logits_b.shape == (600, 10) and probs_b.shape == (600, 10)
    assert jnp.allclose(logits_b, ref_logits_b, atol=1e-4, rtol=1e-4)
    assert jnp.allclose(probs_b, ref_probs_b, atol=1e-4, rtol=1e-4)

    # --- caller-supplied bf16 inputs (no extra wrapper cast pass; looser tol) ---
    x_big_bf16 = x_big.astype(jnp.bfloat16)
    logits_bf, probs_bf = baseline_nn_forward(x_big_bf16, *params)
    jax.block_until_ready((logits_bf, probs_bf))
    assert jnp.allclose(logits_bf, ref_logits_b, atol=3e-2, rtol=3e-2)
    assert jnp.allclose(jnp.sum(probs_bf, axis=1), 1.0, atol=1e-5)

    print("KERNEL_OK")
</pallas_src>

<mosaic_0001>
module attributes {stable_mosaic.version = 11 : i64} {
  func.func @_mlp_kernel(%arg0: i32, %arg1: memref<8x784xf32, #tpu.memory_space<vmem>>, %arg2: memref<784x4xf32, #tpu.memory_space<vmem>>, %arg3: memref<48x16xf32, #tpu.memory_space<vmem>>, %arg4: memref<8x20xf32, #tpu.memory_space<vmem>>) attributes {dimension_semantics = [#tpu.dimension_semantics<parallel>], iteration_bounds = array<i64: 1>, scalar_prefetch = 0 : i64, scratch_operands = 0 : i64, tpu.core_type = #tpu.core_type<tc>, window_params = [{transform_indices = @transform_0, window_bounds = array<i64: 8, 784>}, {pipeline_mode = #tpu.pipeline_mode<synchronous>, transform_indices = @transform_1, window_bounds = array<i64: 784, 4>}, {pipeline_mode = #tpu.pipeline_mode<synchronous>, transform_indices = @transform_2, window_bounds = array<i64: 48, 16>}, {transform_indices = @transform_3, window_bounds = array<i64: 8, 20>}]} {
    %c0 = arith.constant 0 : index
    %c0_0 = arith.constant 0 : index
    %0 = vector.load %arg1[%c0, %c0_0] : memref<8x784xf32, #tpu.memory_space<vmem>>, vector<8x784xf32>
    %c0_1 = arith.constant 0 : index
    %c0_2 = arith.constant 0 : index
    %1 = vector.load %arg2[%c0_1, %c0_2] : memref<784x4xf32, #tpu.memory_space<vmem>>, vector<784x4xf32>
    %c0_3 = arith.constant 0 : index
    %c0_4 = arith.constant 0 : index
    %2 = vector.load %arg3[%c0_3, %c0_4] : memref<48x16xf32, #tpu.memory_space<vmem>>, vector<1x4xf32>
    %c8 = arith.constant 8 : index
    %c0_5 = arith.constant 0 : index
    %3 = vector.load %arg3[%c8, %c0_5] : memref<48x16xf32, #tpu.memory_space<vmem>>, vector<4x15xf32>
    %c16 = arith.constant 16 : index
    %c0_6 = arith.constant 0 : index
    %4 = vector.load %arg3[%c16, %c0_6] : memref<48x16xf32, #tpu.memory_space<vmem>>, vector<1x15xf32>
    %c24 = arith.constant 24 : index
    %c0_7 = arith.constant 0 : index
    %5 = vector.load %arg3[%c24, %c0_7] : memref<48x16xf32, #tpu.memory_space<vmem>>, vector<15x10xf32>
    %c40 = arith.constant 40 : index
    %c0_8 = arith.constant 0 : index
    %6 = vector.load %arg3[%c40, %c0_8] : memref<48x16xf32, #tpu.memory_space<vmem>>, vector<1x10xf32>
    %cst = arith.constant dense<0.000000e+00> : vector<8x4xf32>
    %7 = tpu.matmul %0, %1, %cst {dimension_numbers = #tpu.dot_dimension_numbers<[1], [0], [0], [1], [0, 0, 1, 1], [], []>} : vector<8x784xf32>, vector<784x4xf32>, vector<8x4xf32> -> vector<8x4xf32>
    %8 = vector.broadcast %2 : vector<1x4xf32> to vector<8x4xf32>
    %9 = arith.addf %7, %8 : vector<8x4xf32>
    %cst_9 = arith.constant 0.000000e+00 : f32
    %10 = vector.broadcast %cst_9 : f32 to vector<8x4xf32>
    %11 = arith.maximumf %9, %10 : vector<8x4xf32>
    %cst_10 = arith.constant dense<0.000000e+00> : vector<8x15xf32>
    %12 = tpu.matmul %11, %3, %cst_10 {dimension_numbers = #tpu.dot_dimension_numbers<[1], [0], [0], [1], [0, 0, 1, 1], [], []>} : vector<8x4xf32>, vector<4x15xf32>, vector<8x15xf32> -> vector<8x15xf32>
    %13 = vector.broadcast %4 : vector<1x15xf32> to vector<8x15xf32>
    %14 = arith.addf %12, %13 : vector<8x15xf32>
    %cst_11 = arith.constant 0.000000e+00 : f32
    %15 = vector.broadcast %cst_11 : f32 to vector<8x15xf32>
    %16 = arith.maximumf %14, %15 : vector<8x15xf32>
    %cst_12 = arith.constant dense<0.000000e+00> : vector<8x10xf32>
    %17 = tpu.matmul %16, %5, %cst_12 {dimension_numbers = #tpu.dot_dimension_numbers<[1], [0], [0], [1], [0, 0, 1, 1], [], []>} : vector<8x15xf32>, vector<15x10xf32>, vector<8x10xf32> -> vector<8x10xf32>
    %18 = vector.broadcast %6 : vector<1x10xf32> to vector<8x10xf32>
    %19 = arith.addf %17, %18 : vector<8x10xf32>
    %cst_13 = arith.constant dense<0xFF800000> : vector<8xf32>
    %20 = vector.multi_reduction <maximumf>, %19, %cst_13 [1] : vector<8x10xf32> to vector<8xf32>
    %21 = vector.shape_cast %20 : vector<8xf32> to vector<8x1xf32>
    %22 = vector.broadcast %21 : vector<8x1xf32> to vector<8x10xf32>
    %23 = arith.subf %19, %22 : vector<8x10xf32>
    %24 = math.exp %23 : vector<8x10xf32>
    %cst_14 = arith.constant dense<0.000000e+00> : vector<8xf32>
    %25 = vector.multi_reduction <add>, %24, %cst_14 [1] : vector<8x10xf32> to vector<8xf32>
    %26 = vector.shape_cast %25 : vector<8xf32> to vector<8x1xf32>
    %27 = tpu.reciprocal %26 : vector<8x1xf32> -> vector<8x1xf32>
    %28 = vector.broadcast %27 : vector<8x1xf32> to vector<8x10xf32>
    %29 = arith.mulf %24, %28 : vector<8x10xf32>
    %c0_15 = arith.constant 0 : index
    %c0_16 = arith.constant 0 : index
    %30 = vector.load %arg4[%c0_15, %c0_16] : memref<8x20xf32, #tpu.memory_space<vmem>>, vector<8x10xf32>
    tpu.vector_store %arg4[%c0_15, %c0_16], %19 {strides = array<i32>} : memref<8x20xf32, #tpu.memory_space<vmem>>, vector<8x10xf32>,
    %c0_17 = arith.constant 0 : index
    %c10 = arith.constant 10 : index
    %31 = vector.load %arg4[%c0_17, %c10] : memref<8x20xf32, #tpu.memory_space<vmem>>, vector<8x10xf32>
    tpu.vector_store %arg4[%c0_17, %c10], %29 {strides = array<i32>} : memref<8x20xf32, #tpu.memory_space<vmem>>, vector<8x10xf32>,
    return
  }
  func.func @transform_0(%arg0: i32) -> (i32, i32) {
    %c0_i32 = arith.constant 0 : i32
    %c0_i32_0 = arith.constant 0 : i32
    return %arg0, %c0_i32 : i32, i32
  }
  func.func @transform_1(%arg0: i32) -> (i32, i32) {
    %c0_i32 = arith.constant 0 : i32
    %c0_i32_0 = arith.constant 0 : i32
    %c0_i32_1 = arith.constant 0 : i32
    return %c0_i32, %c0_i32_0 : i32, i32
  }
  func.func @transform_2(%arg0: i32) -> (i32, i32) {
    %c0_i32 = arith.constant 0 : i32
    %c0_i32_0 = arith.constant 0 : i32
    %c0_i32_1 = arith.constant 0 : i32
    return %c0_i32, %c0_i32_0 : i32, i32
  }
  func.func @transform_3(%arg0: i32) -> (i32, i32) {
    %c0_i32 = arith.constant 0 : i32
    %c0_i32_0 = arith.constant 0 : i32
    return %arg0, %c0_i32 : i32, i32
  }
}

</mosaic_0001>

<bundles_post_ra>
// kernel: baseline_nn_forward.1
= control target key start
LH: loop header
LB: loop body
LE: loop exit
PB: predicated region body
PF: predicated region fallthrough
CT: control target
= control target key end

     0   :  { %vm126_vm0 = vcmask 130048   ;;  %vm276_vm1 = vcmask 1043456   ;;  %vm306_vm2 = vcmask 1046528   ;;  %vm272_vm3 = vcmask 31744   ;;  %s739_s1 = inlined_call_operand.vmem [shape: f32[784,4], index: 1, kind: input, shape index: {}]   ;;  %s740_s2 = inlined_call_operand.vmem [shape: f32[48,16], index: 2, kind: input, shape index: {}]   ;;  %s741_s0 = inlined_call_operand.vmem [shape: f32[8,784], index: 0, kind: input, shape index: {}]   ;;  %s742_s3 = inlined_call_operand.vmem [shape: f32[8,20], index: 3, kind: output, shape index: {}]  }
   0x1   :  { %v36_v0 = vld [vmem:[%s739_s1 + $0x78] sm:$0xff]  ;;  %v35_v1 = vld [vmem:[%s739_s1 + $0x70] sm:$0xff]  ;;  %v34_v4 = vld [vmem:[%s739_s1 + $0x68] sm:$0xff]  ;;  %vm302_vm4 = vcmask 121856   ;;  %vm330_vm5 = vcmask 80896   ;;  %vm360_vm10 = vcmask 162896  }
   0x2   :  { %v52_v2 = vld [vmem:[%s739_s1 + $0xf8] sm:$0xff]  ;;  %130 = vmatpush.msra.mxu0 %v36_v0  ;;  %v51_v3 = vld [vmem:[%s739_s1 + $0xf0] sm:$0xff]  ;;  %v50_v5 = vld [vmem:[%s739_s1 + $0xe8] sm:$0xff] }
   0x3   :  { %150 = vmatpush.msra.mxu1 %v52_v2  ;;  %v33_v6 = vld [vmem:[%s739_s1 + $0x60] sm:$0xff]  ;;  %v32_v8 = vld [vmem:[%s739_s1 + $0x58] sm:$0xff]  ;;  %v31_v10 = vld [vmem:[%s739_s1 + $0x50] sm:$0xff] }
   0x4   :  { %131 = vmatpush.msra.mxu0 %v35_v1  ;;  %v49_v7 = vld [vmem:[%s739_s1 + $0xe0] sm:$0xff]  ;;  %v48_v9 = vld [vmem:[%s739_s1 + $0xd8] sm:$0xff]  ;;  %v47_v12 = vld [vmem:[%s739_s1 + $0xd0] sm:$0xff] }
   0x5   :  { %151 = vmatpush.msra.mxu1 %v51_v3  ;;  %v68_v11 = vld [vmem:[%s739_s1 + $0x178] sm:$0xff]  ;;  %v67_v13 = vld [vmem:[%s739_s1 + $0x170] sm:$0xff]  ;;  %v66_v15 = vld [vmem:[%s739_s1 + $0x168] sm:$0xff] }
   0x6   :  { %132 = vmatpush.msra.mxu0 %v34_v4  ;;  %170 = vmatpush.msra.mxu2 %v68_v11  ;;  %v84_v14 = vld [vmem:[%s739_s1 + $0x1f8] sm:$0xff]  ;;  %v83_v16 = vld [vmem:[%s739_s1 + $0x1f0] sm:$0xff]  ;;  %v30_v17 = vld [vmem:[%s739_s1 + $0x48] sm:$0xff] }
   0x7   :  { %152 = vmatpush.msra.mxu1 %v50_v5  ;;  %v46_v18 = vld [vmem:[%s739_s1 + $0xc8] sm:$0xff]  ;;  %190 = vmatpush.msra.mxu3 %v84_v14  ;;  %v65_v19 = vld [vmem:[%s739_s1 + $0x160] sm:$0xff]  ;;  %v64_v23 = vld [vmem:[%s739_s1 + $0x158] sm:$0xff] }
   0x8   :  { %133 = vmatpush.msra.mxu0 %v33_v6  ;;  %171 = vmatpush.msra.mxu2 %v67_v13  ;;  %v82_v20 = vld [vmem:[%s739_s1 + $0x1e8] sm:$0xff]  ;;  %v29_v21 = vld [vmem:[%s739_s1 + $0x40] sm:$0xff]  ;;  %v28_v25 = vld [vmem:[%s739_s1 + $0x38] sm:$0xff] }
   0x9   :  { %153 = vmatpush.msra.mxu1 %v49_v7  ;;  %v45_v22 = vld [vmem:[%s739_s1 + $0xc0] sm:$0xff]  ;;  %191 = vmatpush.msra.mxu3 %v83_v16  ;;  %v44_v26 = vld [vmem:[%s739_s1 + $0xb8] sm:$0xff]  ;;  %v63_v27 = vld [vmem:[%s739_s1 + $0x150] sm:$0xff] }
   0xa   :  { %134 = vmatpush.msra.mxu0 %v32_v8  ;;  %172 = vmatpush.msra.mxu2 %v66_v15  ;;  %v81_v24 = vld [vmem:[%s739_s1 + $0x1e0] sm:$0xff]  ;;  %v80_v28 = vld [vmem:[%s739_s1 + $0x1d8] sm:$0xff]  ;;  %v27_v29 = vld [vmem:[%s739_s1 + $0x30] sm:$0xff] }
   0xb   :  { %154 = vmatpush.msra.mxu1 %v48_v9  ;;  %192 = vmatpush.msra.mxu3 %v82_v20  ;;  %v43_v30 = vld [vmem:[%s739_s1 + $0xb0] sm:$0xff]  ;;  %v62_v31 = vld [vmem:[%s739_s1 + $0x148] sm:$0xff]  ;;  %v61_v35 = vld [vmem:[%s739_s1 + $0x140] sm:$0xff] }
   0xc   :  { %135 = vmatpush.msra.mxu0 %v31_v10  ;;  %173 = vmatpush.msra.mxu2 %v65_v19  ;;  %v79_v32 = vld [vmem:[%s739_s1 + $0x1d0] sm:$0xff]  ;;  %v26_v33 = vld [vmem:[%s739_s1 + $0x28] sm:$0xff]  ;;  %v25_v37 = vld [vmem:[%s739_s1 + $0x20] sm:$0xff] }
   0xd   :  { %155 = vmatpush.msra.mxu1 %v47_v12  ;;  %193 = vmatpush.msra.mxu3 %v81_v24  ;;  %v42_v34 = vld [vmem:[%s739_s1 + $0xa8] sm:$0xff]  ;;  %v41_v38 = vld [vmem:[%s739_s1 + $0xa0] sm:$0xff]  ;;  %v60_v39 = vld [vmem:[%s739_s1 + $0x138] sm:$0xff] }
   0xe   :  { %136 = vmatpush.msra.mxu0 %v30_v17  ;;  %174 = vmatpush.msra.mxu2 %v64_v23  ;;  %v78_v36 = vld [vmem:[%s739_s1 + $0x1c8] sm:$0xff]  ;;  %v77_v40 = vld [vmem:[%s739_s1 + $0x1c0] sm:$0xff]  ;;  %v24_v41 = vld [vmem:[%s739_s1 + $0x18] sm:$0xff] }
   0xf   :  { %156 = vmatpush.msra.mxu1 %v46_v18  ;;  %194 = vmatpush.msra.mxu3 %v80_v28  ;;  %v40_v42 = vld [vmem:[%s739_s1 + $0x98] sm:$0xff]  ;;  %v59_v43 = vld [vmem:[%s739_s1 + $0x130] sm:$0xff]  ;;  %v58_v47 = vld [vmem:[%s739_s1 + $0x128] sm:$0xff] }
  0x10   :  { %137 = vmatpush.msra.mxu0 %v29_v21  ;;  %175 = vmatpush.msra.mxu2 %v63_v27  ;;  %v76_v44 = vld [vmem:[%s739_s1 + $0x1b8] sm:$0xff]  ;;  %v23_v45 = vld [vmem:[%s739_s1 + $0x10] sm:$0xff]  ;;  %v22_v49 = vld [vmem:[%s739_s1 + $0x8] sm:$0xff] }
  0x11   :  { %157 = vmatpush.msra.mxu1 %v45_v22  ;;  %195 = vmatpush.msra.mxu3 %v79_v32  ;;  %v39_v46 = vld [vmem:[%s739_s1 + $0x90] sm:$0xff]  ;;  %v38_v50 = vld [vmem:[%s739_s1 + $0x88] sm:$0xff]  ;;  %v57_v51 = vld [vmem:[%s739_s1 + $0x120] sm:$0xff] }
  0x12   :  { %138 = vmatpush.msra.mxu0 %v28_v25  ;;  %176 = vmatpush.msra.mxu2 %v62_v31  ;;  %v75_v48 = vld [vmem:[%s739_s1 + $0x1b0] sm:$0xff]  ;;  %v74_v52 = vld [vmem:[%s739_s1 + $0x1a8] sm:$0xff]  ;;  %v21_v53 = vld [vmem:[%s739_s1] sm:$0xff] }
  0x13   :  { %158 = vmatpush.msra.mxu1 %v44_v26  ;;  %196 = vmatpush.msra.mxu3 %v78_v36  ;;  %v37_v54 = vld [vmem:[%s739_s1 + $0x80] sm:$0xff]  ;;  %v100_v55 = vld [vmem:[%s739_s1 + $0x278] sm:$0xff]  ;;  %v99_v59 = vld [vmem:[%s739_s1 + $0x270] sm:$0xff] }
  0x14   :  { %139 = vmatpush.msra.mxu0 %v27_v29  ;;  %177 = vmatpush.msra.mxu2 %v61_v35  ;;  %v116_v56 = vld [vmem:[%s739_s1 + $0x2f8] sm:$0xff]  ;;  %v73_v58 = vld [vmem:[%s739_s1 + $0x1a0] sm:$0xff]  ;;  %v115_v60 = vld [vmem:[%s739_s1 + $0x2f0] sm:$0xff] }
  0x15   :  { %159 = vmatpush.msra.mxu1 %v43_v30  ;;  %197 = vmatpush.msra.mxu3 %v77_v40  ;;  %v56_v57 = vld [vmem:[%s739_s1 + $0x118] sm:$0xff]  ;;  %v55_v61 = vld [vmem:[%s739_s1 + $0x110] sm:$0xff]  ;;  %v98_v63 = vld [vmem:[%s739_s1 + $0x268] sm:$0xff] }
  0x16   :  { %140 = vmatpush.msra.mxu0 %v26_v33  ;;  %178 = vmatpush.msra.mxu2 %v60_v39  ;;  %v72_v62 = vld [vmem:[%s739_s1 + $0x198] sm:$0xff]  ;;  %v114_v0 = vld [vmem:[%s739_s1 + $0x2e8] sm:$0xff]  ;;  %v97_v1 = vld [vmem:[%s739_s1 + $0x260] sm:$0xff] }
  0x17   :  { %160 = vmatpush.msra.mxu1 %v42_v34  ;;  %198 = vmatpush.msra.mxu3 %v76_v44  ;;  %v54_v2 = vld [vmem:[%s739_s1 + $0x108] sm:$0xff]  ;;  %v71_v3 = vld [vmem:[%s739_s1 + $0x190] sm:$0xff]  ;;  %v113_v4 = vld [vmem:[%s739_s1 + $0x2e0] sm:$0xff] }
  0x18   :  { %141 = vmatpush.msra.mxu0 %v25_v37  ;;  %179 = vmatpush.msra.mxu2 %v59_v43  ;;  %v53_v5 = vld [vmem:[%s739_s1 + $0x100] sm:$0xff]  ;;  %v70_v6 = vld [vmem:[%s739_s1 + $0x188] sm:$0xff]  ;;  %v96_v7 = vld [vmem:[%s739_s1 + $0x258] sm:$0xff] }
  0x19   :  { %161 = vmatpush.msra.mxu1 %v41_v38  ;;  %199 = vmatpush.msra.mxu3 %v75_v48  ;;  %v112_v8 = vld [vmem:[%s739_s1 + $0x2d8] sm:$0xff]  ;;  %v16_v9 = vld [vmem:[%s741_s0 + $0x10] sm:$0xff]  ;;  %v69_v10 = vld [vmem:[%s739_s1 + $0x180] sm:$0xff] }
  0x1a   :  { %142 = vmatpush.msra.mxu0 %v24_v41  ;;  %180 = vmatpush.msra.mxu2 %v58_v47  ;;  %v95_v11 = vld [vmem:[%s739_s1 + $0x250] sm:$0xff]  ;;  %v118_v13 = vld [vmem:[%s739_s1 + $0x308] sm:$0xff]  ;;  %v14_v14 = vld [vmem:[%s741_s0] sm:$0xff] }
  0x1b   :  { %162 = vmatpush.msra.mxu1 %v40_v42  ;;  %200 = vmatpush.msra.mxu3 %v74_v52  ;;  %v111_v12 = vld [vmem:[%s739_s1 + $0x2d0] sm:$0xff]  ;;  %v94_v15 = vld [vmem:[%s739_s1 + $0x248] sm:$0xff]  ;;  %v17_v17 = vld [vmem:[%s741_s0 + $0x18] sm:$0xff] }
  0x1c   :  { %143 = vmatpush.msra.mxu0 %v23_v45  ;;  %181 = vmatpush.msra.mxu2 %v57_v51  ;;  %v110_v16 = vld [vmem:[%s739_s1 + $0x2c8] sm:$0xff]  ;;  %v93_v19 = vld [vmem:[%s739_s1 + $0x240] sm:$0xff]  ;;  %v92_v22 = vld [vmem:[%s739_s1 + $0x238] sm:$0xff] }
  0x1d   :  { %163 = vmatpush.msra.mxu1 %v39_v46  ;;  %201 = vmatpush.msra.mxu3 %v73_v58  ;;  %v15_v18 = vld [vmem:[%s741_s0 + $0x8] sm:$0xff]  ;;  %v109_v20 = vld [vmem:[%s739_s1 + $0x2c0] sm:$0xff]  ;;  %v108_v23 = vld [vmem:[%s739_s1 + $0x2b8] sm:$0xff] }
  0x1e   :  { %144 = vmatpush.msra.mxu0 %v22_v49  ;;  %182 = vmatpush.msra.mxu2 %v56_v57  ;;  %v117_v21 = vld [vmem:[%s739_s1 + $0x300] sm:$0xff]  ;;  %v20_v24 = vld [vmem:[%s741_s0 + $0x30] sm:$0xff]  ;;  %v90_v27 = vld [vmem:[%s739_s1 + $0x228] sm:$0xff] }
  0x1f   :  { %164 = vmatpush.msra.mxu1 %v38_v50  ;;  %202 = vmatpush.msra.mxu3 %v72_v62  ;;  %v91_v25 = vld [vmem:[%s739_s1 + $0x230] sm:$0xff]  ;;  %v106_v28 = vld [vmem:[%s739_s1 + $0x2a8] sm:$0xff]  ;;  %v89_v29 = vld [vmem:[%s739_s1 + $0x220] sm:$0xff] }
  0x20   :  { %145 = vmatpush.msra.mxu0 %v21_v53  ;;  %183 = vmatpush.msra.mxu2 %v55_v61  ;;  %v107_v26 = vld [vmem:[%s739_s1 + $0x2b0] sm:$0xff]  ;;  %v105_v30 = vld [vmem:[%s739_s1 + $0x2a0] sm:$0xff]  ;;  %v88_v31 = vld [vmem:[%s739_s1 + $0x218] sm:$0xff] }
  0x21   :  { %165 = vmatpush.msra.mxu1 %v37_v54  ;;  %203 = vmatpush.msra.mxu3 %v71_v3  ;;  %v104_v32 = vld [vmem:[%s739_s1 + $0x298] sm:$0xff]  ;;  %v87_v33 = vld [vmem:[%s739_s1 + $0x210] sm:$0xff]  ;;  %v86_v35 = vld [vmem:[%s739_s1 + $0x208] sm:$0xff] }
  0x22   :  { %210 = vmatpush.msrb.mxu0 %v100_v55  ;;  %184 = vmatpush.msra.mxu2 %v54_v2  ;;  %v103_v34 = vld [vmem:[%s739_s1 + $0x290] sm:$0xff]  ;;  %v102_v36 = vld [vmem:[%s739_s1 + $0x288] sm:$0xff]  ;;  %v85_v37 = vld [vmem:[%s739_s1 + $0x200] sm:$0xff] }
  0x23   :  { %230 = vmatpush.msrb.mxu1 %v116_v56  ;;  %204 = vmatpush.msra.mxu3 %v70_v6  ;;  %v101_v38 = vld [vmem:[%s739_s1 + $0x280] sm:$0xff]  ;;  %v19_v40 = vld [vmem:[%s741_s0 + $0x28] sm:$0xff] }
  0x24   :  { %211 = vmatpush.msrb.mxu0 %v99_v59  ;;  %185 = vmatpush.msra.mxu2 %v53_v5  ;;  %v18_v39 = vld [vmem:[%s741_s0 + $0x20] sm:$0xff]  ;;  %v120_v41 = vld [vmem:[%s740_s2 + $0x8] sm:$0xf]  ;;  %v122_v59 = vld [vmem:[%s740_s2 + $0x18] sm:$0xff] }
  0x25   :  { %231 = vmatpush.msrb.mxu1 %v115_v60  ;;  %186 = vmatmul.f32.vlgmr.msra.gmra.mxu2 %v16_v9  ;;  %v123_v42 = vld [vmem:[%s740_s2 + $0x20] sm:$0x7f]  ;;  %v373_v60 = vld [vmem:[%s740_s2 + $0x10] ss:$0 sm:$0xff] }
  0x26   :  { %212 = vmatpush.msrb.mxu0 %v98_v63  ;;  %205 = vmatpush.msra.mxu3 %v69_v10  ;;  %v372_v43 = vld [vmem:[%s740_s2] ss:$0 sm:$0xff] }
  0x27   :  { %232 = vmatpush.msrb.mxu1 %v114_v0  ;;  %264 = vmatpush.msrb.mxu2 %v118_v13  ;;  %v374_v0 = vld [vmem:[%s740_s2 + $0x28] ss:$0 sm:$0xff]  ;;  %s379_s2 = smov 10  }
  0x28   :  { %213 = vmatpush.msrb.mxu0 %v97_v1  ;;  %206 = vmatmul.f32.vlgmr.msra.gmra.mxu3 %v17_v17 }
  0x29   :  { %233 = vmatpush.msrb.mxu1 %v113_v4  ;;  %146 = vmatmul.f32.vlgmr.msra.gmra.mxu0 %v14_v14 }
  0x2a   :  { %214 = vmatpush.msrb.mxu0 %v96_v7  ;;  %166 = vmatmul.f32.vlgmr.msra.gmra.mxu1 %v15_v18 }
  0x2b   :  { %234 = vmatpush.msrb.mxu1 %v112_v8  ;;  %265 = vmatpush.msrb.mxu2 %v117_v21 }
  0x2c   :  { %215 = vmatpush.msrb.mxu0 %v95_v11  ;;  %367 = vmatpush.msk.msrb.mxu3 %vm276_vm1, %v120_v41 }
  0x2d   :  { %235 = vmatpush.msrb.mxu1 %v111_v12  ;;  %366 = vmatmul.msk.f32.vlgmr.msrb.gmra.mxu2 %vm126_vm0, %v20_v24 }
  0x2e   :  { %216 = vmatpush.msrb.mxu0 %v94_v15  ;;  %369 = vmatpush.msk.msra.mxu2 %vm306_vm2, %v123_v42 }
  0x2f   :  { %236 = vmatpush.msrb.mxu1 %v110_v16 }
  0x30   :  { %217 = vmatpush.msrb.mxu0 %v93_v19  ;;  %325 = vmatpush.msra.mxu2 %v122_v59 }
  0x31   :  { %237 = vmatpush.msrb.mxu1 %v109_v20 }
  0x32   :  { %218 = vmatpush.msrb.mxu0 %v92_v22 }
  0x33   :  { %238 = vmatpush.msrb.mxu1 %v108_v23 }
  0x34   :  { %219 = vmatpush.msrb.mxu0 %v91_v25 }
  0x35   :  { %239 = vmatpush.msrb.mxu1 %v107_v26 }
  0x36   :  { %220 = vmatpush.msrb.mxu0 %v90_v27 }
  0x37   :  { %240 = vmatpush.msrb.mxu1 %v106_v28 }
  0x38   :  { %221 = vmatpush.msrb.mxu0 %v89_v29 }
  0x39   :  { %241 = vmatpush.msrb.mxu1 %v105_v30 }
  0x3a   :  { %222 = vmatpush.msrb.mxu0 %v88_v31 }
  0x3b   :  { %242 = vmatpush.msrb.mxu1 %v104_v32 }
  0x3c   :  { %223 = vmatpush.msrb.mxu0 %v87_v33 }
  0x3d   :  { %243 = vmatpush.msrb.mxu1 %v103_v34 }
  0x3e   :  { %224 = vmatpush.msrb.mxu0 %v86_v35 }
  0x3f   :  { %244 = vmatpush.msrb.mxu1 %v102_v36 }
  0x40   :  { %225 = vmatpush.msrb.mxu0 %v85_v37 }
  0x41   :  { %245 = vmatpush.msrb.mxu1 %v101_v38  ;;  %226 = vmatmul.f32.vlgmr.msrb.gmra.mxu0 %v18_v39 }
  0x42   :  { %246 = vmatmul.f32.vlgmr.msrb.gmra.mxu1 %v19_v40 }
  0xa6   :  { %v147_v44 = vpop.f32.mrf.mxu0 }
  0xa7   :  { %v148_v45 = vadd.f32 %v372_v43, %v147_v44  ;;  %v167_v46 = vpop.f32.mrf.mxu1 }
  0xa8   :  { %v187_v48 = vpop.f32.mrf.mxu2 }
  0xa9   :  { %v168_v47 = vadd.f32 %v167_v46, %v148_v45 }
  0xab   :  { %v188_v49 = vadd.f32 %v187_v48, %v168_v47  ;;  %v207_v50 = vpop.f32.mrf.mxu3 }
  0xad   :  { %v208_v51 = vadd.f32 %v207_v50, %v188_v49 }
  0xb0   :  { %v267_v55 = vpop.f32.mrf.mxu2 }
  0xbe   :  { %v227_v52 = vpop.f32.mrf.mxu0 }
  0xbf   :  { %v247_v53 = vpop.f32.mrf.mxu1  ;;  %v228_v54 = vadd.f32 %v227_v52, %v208_v51 }
  0xc1   :  { %v248_v56 = vadd.f32 %v247_v53, %v228_v54 }
  0xc3   :  { %v268_v57 = vadd.f32 %v267_v55, %v248_v56 }
  0xc5   :  { %v270_v58 = vmax.f32 %v268_v57, 0.0 }
  0xc7   :  { %368 = vmatmul.msk.f32.vlgmr.msrb.gmra.mxu3 %vm272_vm3, %v270_v58 }
 0x14a   :  { %v297_v61 = vpop.f32.mrf.mxu3 }
 0x14b   :  { %v298_v62 = vadd.f32 %v373_v60, %v297_v61 }
 0x14d   :  { %v300_v63 = vmax.f32 %v298_v62, 0.0 }
 0x14f   :  { %370 = vmatmul.msk.f32.vlgmr.msra.gmra.mxu2 %vm302_vm4, %v300_v63 }
 0x1d2   :  { %v327_v1 = vpop.f32.mrf.mxu2 }
 0x1d3   :  { %v328_v2 = vadd.f32 %v374_v0, %v327_v1 }
 0x1d5   :  { %v331_v3 = vsel %vm330_vm5, %v328_v2, -inf  ;;  %355 = vst.msk [vmem:[%s742_s3] sm:$0xff] %vm330_vm5, %v328_v2 }
 0x1d6   :  { %332 = vmax.xlane.f32.xlu0 %v331_v3 }
 0x249   :  { %v333_v4 = vpop.xlane.xlu0 %332 }
 0x24a   :  { %v334_v5 = vsub.f32 %v328_v2, %v333_v4 }
 0x24c   :  { %v335_v6 = vmul.f32 1.442695, %v334_v5 }
 0x24e   :  { %375 = vpow2.f32 %v335_v6 }
 0x254   :  { %v376_v7 = vpop.eup %375 }
 0x255   :  { %v337_v8 = vsel %vm330_vm5, %v376_v7, 0.0 }
 0x256   :  { %338 = vadd.xlane.f32.xlu0 %v337_v8 }
 0x2c9   :  { %v339_v9 = vpop.xlane.xlu0 %338 }
 0x2ca   :  { %377 = vrcp.f32 %v339_v9  ;;  %v351_v13 = vand.u32 2147483648, %v339_v9  ;;  %v349_v15 = vand.u32 2147483647, %v339_v9  ;;  %vm345_vm7 = vweird.f32 %v339_v9 }
 0x2cc   :  { %v352_v17 = vor.u32 1.1754944e-38, %v351_v13  ;;  %vm350_vm9 = vcmp.eq.f32.partialorder %v349_v15, 8.507059e+37 }
 0x2d0   :  { %v378_v10 = vpop.eup %377 }
 0x2d1   :  { %v341_v11 = vmul.f32 %v378_v10, %v339_v9  ;;  %vm346_vm6 = vweird.f32 %v378_v10 }
 0x2d2   :  { %vm347_vm8 = vmor %vm345_vm7, %vm346_vm6 }
 0x2d3   :  { %v342_v12 = vsub.f32 1.0, %v341_v11 }
 0x2d5   :  { %v343_v14 = vmul.f32 %v378_v10, %v342_v12 }
 0x2d7   :  { %v344_v16 = vadd.f32 %v378_v10, %v343_v14 }
 0x2d9   :  { %v348_v18 = vsel %vm347_vm8, %v378_v10, %v344_v16 }
 0x2da   :  { %v353_v19 = vsel %vm350_vm9, %v352_v17, %v348_v18 }
 0x2db   :  { %v354_v20 = vmul.f32 %v376_v7, %v353_v19 }
 0x2dd   :  { %357 = vrot.lane.b32.xlu1 %v354_v20, %s379_s2 }
 0x34f   :  { %v358_v21 = vpop.permute.xlu1 %357 }
 0x350   :  { %361 = vst.msk [vmem:[%s742_s3] sm:$0xff] %vm360_vm10, %v358_v21 }

</bundles_post_ra>
